<compile_context>
chip_gen: v7x
topology: tpu7x:2x2x1
jax: 0.10.0
libtpu: 0.0.40
codegen_flags: <defaults>
</compile_context>

<pallas_src>
import functools

import jax
import jax.numpy as jnp
from jax.experimental import pallas as pl
from jax.experimental.pallas import tpu as pltpu


def _round_up(x, m):
    return ((x + m - 1) // m) * m


def _rowwise_kernel(emb_ref, logits_ref, lab_ref, nemb_ref, ce_ref):
    # Pass 1: L2-normalize rows (F.normalize(p=2, dim=1)) and compute the
    # per-row-block cross-entropy partial sum.  O(N*(D+C)), runs once.
    x = emb_ref[...].astype(jnp.float32)
    sq = jnp.sum(x * x, axis=1, keepdims=True)
    # rsqrt goes to the EUP slot; equivalent to x / max(||x||, 1e-12).
    nemb_ref[...] = x * jax.lax.rsqrt(jnp.maximum(sq, 1e-24))

    logits = logits_ref[...].astype(jnp.float32)
    lab = lab_ref[...]                                    # (T, 1) int32, -1 == pad
    row_max = jnp.max(logits, axis=1, keepdims=True)
    shifted = logits - row_max
    lse = jnp.log(jnp.sum(jnp.exp(shifted), axis=1, keepdims=True)) + row_max
    tm, c = logits.shape
    cls = jax.lax.broadcasted_iota(jnp.int32, (tm, c), 1)
    picked = jnp.sum(jnp.where(cls == lab, logits, 0.0), axis=1, keepdims=True)
    ce_rows = jnp.where(lab >= 0, lse - picked, 0.0)

    lane = jax.lax.broadcasted_iota(jnp.int32, (1, 128), 1)
    ce_ref[...] = jnp.where(lane == 0, jnp.sum(ce_rows), 0.0)


def _pairwise_kernel(i_tab_ref, j_tab_ref, rows_ref, cols_ref,
                     lab_i_ref, lab_j_ref, out_ref, *, angular_margin):
    # One upper-triangular tile pair (bi <= bj) per grid step.
    t = pl.program_id(0)
    bi = i_tab_ref[t]
    bj = j_tab_ref[t]
    # Off-diagonal tile pairs also stand in for their mirrored (bj, bi) tile.
    w = jnp.where(bi == bj, 1.0, 2.0)

    # Cosine-similarity tile on the MXU: contract the feature dim -> (T, T).
    cos = jax.lax.dot_general(rows_ref[...], cols_ref[...],
                              (((1,), (1,)), ((), ())),
                              preferred_element_type=jnp.float32)
    cos = jnp.clip(cos, -0.99999, 0.99999)
    geo = jnp.arccos(cos)

    lab_i = lab_i_ref[...]                                # (T, 1) int32
    lab_j = lab_j_ref[...]                                # (1, T) int32
    eq = lab_i == lab_j
    valid = (lab_i >= 0) & (lab_j >= 0)                   # mask padding pairs
    eq_valid = eq & valid
    neq_valid = valid & jnp.logical_not(eq)

    hinge = jnp.maximum(angular_margin - geo, 0.0)
    pos = jnp.sum(jnp.where(eq_valid, geo * geo, 0.0))
    neg = jnp.sum(jnp.where(neq_valid, hinge * hinge, 0.0))

    # Lane-dense partial-sum row: lane 0 = positive term, lane 1 = negative.
    lane = jax.lax.broadcasted_iota(jnp.int32, (1, 128), 1)
    out_ref[...] = jnp.where(lane == 0, w * pos,
                             jnp.where(lane == 1, w * neg, 0.0))


def amc_loss(embeddings, logits, labels, angular_margin=0.5, lambda_=0.1, *,
             tile=None):
    """Pallas implementation of AMCLoss.forward. Returns a scalar f32."""
    n, d = embeddings.shape
    c = logits.shape[1]

    # Lane-dense tiles (multiple of 128).  tile=128 maximizes the symmetry
    # saving ((nb+1)/(2nb) of the full-grid work), minimizes padding waste and
    # keeps >= 2 row blocks (load balance / megacore) as soon as N > 128.
    max_tile = _round_up(n, 128)
    if tile is None:
        tile = 128
    tile = min(_round_up(int(tile), 128), max_tile)
    n_pad = _round_up(n, tile)
    nb = n_pad // tile
    pad = n_pad - n

    emb_p = jnp.pad(embeddings, ((0, pad), (0, 0)))
    logits_p = jnp.pad(logits, ((0, pad), (0, 0)))
    labels_p = jnp.pad(labels.astype(jnp.int32), (0, pad), constant_values=-1)
    lab_col = labels_p.reshape(n_pad, 1)
    lab_row = labels_p.reshape(1, n_pad)

    # Pass 1: normalize rows once + per-row-block cross entropy.
    nemb, ce_parts = pl.pallas_call(
        _rowwise_kernel,
        out_shape=(jax.ShapeDtypeStruct((n_pad, d), jnp.float32),
                   jax.ShapeDtypeStruct((nb, 128), jnp.float32)),
        grid=(nb,),
        in_specs=[pl.BlockSpec((tile, d), lambda i: (i, 0)),
                  pl.BlockSpec((tile, c), lambda i: (i, 0)),
                  pl.BlockSpec((tile, 1), lambda i: (i, 0))],
        out_specs=[pl.BlockSpec((tile, d), lambda i: (i, 0)),
                   pl.BlockSpec((1, 128), lambda i: (i, 0))],
        compiler_params=pltpu.CompilerParams(dimension_semantics=("parallel",)),
    )(emb_p, logits_p, lab_col)

    # Pass 2: only the upper-triangular tile pairs of the symmetric pairwise
    # matrix, flattened to a 1D "parallel" grid via scalar-prefetched tables.
    pairs = [(i, j) for i in range(nb) for j in range(i, nb)]
    num_pairs = len(pairs)
    i_tab = jnp.asarray([p[0] for p in pairs], dtype=jnp.int32)
    j_tab = jnp.asarray([p[1] for p in pairs], dtype=jnp.int32)

    cp_kwargs = dict(dimension_semantics=("parallel",))
    if tile >= 512:
        # T x T f32 temporaries outgrow v5e's 16 MiB default scoped VMEM.
        cp_kwargs["vmem_limit_bytes"] = 100 * 1024 * 1024

    kernel = functools.partial(_pairwise_kernel,
                               angular_margin=float(angular_margin))
    partials = pl.pallas_call(
        kernel,
        out_shape=jax.ShapeDtypeStruct((num_pairs, 128), jnp.float32),
        grid_spec=pltpu.PrefetchScalarGridSpec(
            num_scalar_prefetch=2,
            grid=(num_pairs,),
            in_specs=[
                pl.BlockSpec((tile, d), lambda t, it, jt: (it[t], 0)),  # rows
                pl.BlockSpec((tile, d), lambda t, it, jt: (jt[t], 0)),  # cols
                pl.BlockSpec((tile, 1), lambda t, it, jt: (it[t], 0)),  # lab col view
                pl.BlockSpec((1, tile), lambda t, it, jt: (0, jt[t])),  # lab row view
            ],
            out_specs=pl.BlockSpec((1, 128), lambda t, it, jt: (t, 0)),
        ),
        compiler_params=pltpu.CompilerParams(**cp_kwargs),
    )(i_tab, j_tab, nemb, nemb, lab_col, lab_row)

    pos_sum = jnp.sum(partials[:, 0])
    neg_sum = jnp.sum(partials[:, 1])
    ce_sum = jnp.sum(ce_parts[:, 0])

    # eq/neq pair counts are analytic (O(N) wrapper work), not per-tile:
    # eq_sum = sum_c count_c^2 (self-pairs included, matching the reference).
    counts = jnp.zeros((c,), jnp.float32).at[labels.astype(jnp.int32)].add(1.0)
    eq_sum = jnp.sum(counts * counts)
    n_f = float(n)
    neq_sum = n_f * n_f - eq_sum
    # NOTE: all-identical labels -> neq_sum == 0 -> NaN, matching the PyTorch
    # reference (division by (~labels_eq).sum() == 0).
    amc = pos_sum / eq_sum + neg_sum / neq_sum
    ce = ce_sum / n_f
    return ce + lambda_ * amc


def amc_loss_ref(embeddings, logits, labels, angular_margin=0.5, lambda_=0.1):
    """Pure-JAX reference matching the PyTorch module."""
    norm = jnp.maximum(jnp.linalg.norm(embeddings, axis=1, keepdims=True), 1e-12)
    nemb = embeddings / norm
    cos = jnp.matmul(nemb, nemb.T, precision=jax.lax.Precision.HIGHEST)
    cos = jnp.clip(cos, -0.99999, 0.99999)
    geo = jnp.arccos(cos)
    eq = (labels[:, None] == labels[None, :]).astype(jnp.float32)
    neq = 1.0 - eq
    pos = jnp.sum(eq * geo ** 2) / jnp.sum(eq)
    neg = jnp.sum(neq * jnp.maximum(angular_margin - geo, 0.0) ** 2) / jnp.sum(neq)
    amc = pos + neg
    logp = jax.nn.log_softmax(logits, axis=1)
    ce = -jnp.mean(logp[jnp.arange(labels.shape[0]), labels])
    return ce + lambda_ * amc


if __name__ == "__main__":
    key = jax.random.PRNGKey(0)
    cases = [
        # (N, D, C, tile):
        (12, 32, 8, None),    # single 128-tile, heavy row padding, 1 pair
        (160, 32, 8, None),   # 2x2 tile triangle: 3 pairs, off-diag doubled
        (300, 16, 10, 256),   # explicit larger tile, 2 blocks / 3 pairs
    ]
    for n, d, c, tile in cases:
        key, k_emb, k_log, k_lab = jax.random.split(key, 4)
        embeddings = jax.random.normal(k_emb, (n, d), dtype=jnp.float32)
        logits = jax.random.normal(k_log, (n, c), dtype=jnp.float32)
        labels = jax.random.randint(k_lab, (n,), 0, c, dtype=jnp.int32)

        loss = amc_loss(embeddings, logits, labels,
                        angular_margin=0.5, lambda_=0.1, tile=tile)
        loss = jax.block_until_ready(loss)

        ref = amc_loss_ref(embeddings, logits, labels,
                           angular_margin=0.5, lambda_=0.1)
        assert jnp.allclose(loss, ref, rtol=1e-4, atol=1e-4), (n, loss, ref)

    print("KERNEL_OK")
</pallas_src>

<mosaic_0001>
module attributes {stable_mosaic.version = 11 : i64} {
  func.func @_rowwise_kernel(%arg0: i32, %arg1: memref<128x32xf32, #tpu.memory_space<vmem>>, %arg2: memref<128x8xf32, #tpu.memory_space<vmem>>, %arg3: memref<128x1xi32, #tpu.memory_space<vmem>>, %arg4: memref<128x32xf32, #tpu.memory_space<vmem>>, %arg5: memref<1x128xf32, #tpu.memory_space<vmem>>) attributes {dimension_semantics = [#tpu.dimension_semantics<parallel>], iteration_bounds = array<i64: 1>, scalar_prefetch = 0 : i64, scratch_operands = 0 : i64, tpu.core_type = #tpu.core_type<tc>, window_params = [{transform_indices = @transform_0, window_bounds = array<i64: 128, 32>}, {transform_indices = @transform_1, window_bounds = array<i64: 128, 8>}, {transform_indices = @transform_2, window_bounds = array<i64: 128, 1>}, {transform_indices = @transform_3, window_bounds = array<i64: 128, 32>}, {transform_indices = @transform_4, window_bounds = array<i64: 1, 128>}]} {
    %c0 = arith.constant 0 : index
    %c0_0 = arith.constant 0 : index
    %0 = vector.load %arg1[%c0, %c0_0] : memref<128x32xf32, #tpu.memory_space<vmem>>, vector<128x32xf32>
    %1 = arith.mulf %0, %0 : vector<128x32xf32>
    %cst = arith.constant dense<0.000000e+00> : vector<128xf32>
    %2 = vector.multi_reduction <add>, %1, %cst [1] : vector<128x32xf32> to vector<128xf32>
    %3 = vector.shape_cast %2 : vector<128xf32> to vector<128x1xf32>
    %cst_1 = arith.constant 1.000000e-24 : f32
    %4 = vector.broadcast %cst_1 : f32 to vector<128x1xf32>
    %5 = arith.maximumf %3, %4 : vector<128x1xf32>
    %6 = math.rsqrt %5 : vector<128x1xf32>
    %7 = vector.broadcast %6 : vector<128x1xf32> to vector<128x32xf32>
    %8 = arith.mulf %0, %7 : vector<128x32xf32>
    %c0_2 = arith.constant 0 : index
    %c0_3 = arith.constant 0 : index
    %9 = vector.load %arg4[%c0_2, %c0_3] : memref<128x32xf32, #tpu.memory_space<vmem>>, vector<128x32xf32>
    tpu.vector_store %arg4[%c0_2, %c0_3], %8 {strides = array<i32>} : memref<128x32xf32, #tpu.memory_space<vmem>>, vector<128x32xf32>,
    %c0_4 = arith.constant 0 : index
    %c0_5 = arith.constant 0 : index
    %10 = vector.load %arg2[%c0_4, %c0_5] : memref<128x8xf32, #tpu.memory_space<vmem>>, vector<128x8xf32>
    %c0_6 = arith.constant 0 : index
    %c0_7 = arith.constant 0 : index
    %11 = vector.load %arg3[%c0_6, %c0_7] : memref<128x1xi32, #tpu.memory_space<vmem>>, vector<128x1xi32>
    %cst_8 = arith.constant dense<0xFF800000> : vector<128xf32>
    %12 = vector.multi_reduction <maximumf>, %10, %cst_8 [1] : vector<128x8xf32> to vector<128xf32>
    %13 = vector.shape_cast %12 : vector<128xf32> to vector<128x1xf32>
    %14 = vector.broadcast %13 : vector<128x1xf32> to vector<128x8xf32>
    %15 = arith.subf %10, %14 : vector<128x8xf32>
    %16 = math.exp %15 : vector<128x8xf32>
    %cst_9 = arith.constant dense<0.000000e+00> : vector<128xf32>
    %17 = vector.multi_reduction <add>, %16, %cst_9 [1] : vector<128x8xf32> to vector<128xf32>
    %18 = vector.shape_cast %17 : vector<128xf32> to vector<128x1xf32>
    %19 = math.log %18 : vector<128x1xf32>
    %20 = arith.addf %19, %13 : vector<128x1xf32>
    %21 = tpu.iota {dimensions = array<i32: 1>} : vector<128x8xi32>
    %22 = vector.broadcast %11 : vector<128x1xi32> to vector<128x8xi32>
    %23 = arith.cmpi eq, %21, %22 : vector<128x8xi32>
    %cst_10 = arith.constant 0.000000e+00 : f32
    %24 = vector.broadcast %cst_10 : f32 to vector<128x8xf32>
    %25 = arith.select %23, %10, %24 : vector<128x8xi1>, vector<128x8xf32>
    %cst_11 = arith.constant dense<0.000000e+00> : vector<128xf32>
    %26 = vector.multi_reduction <add>, %25, %cst_11 [1] : vector<128x8xf32> to vector<128xf32>
    %27 = vector.shape_cast %26 : vector<128xf32> to vector<128x1xf32>
    %c0_i32 = arith.constant 0 : i32
    %28 = vector.broadcast %c0_i32 : i32 to vector<128x1xi32>
    %29 = arith.cmpi sge, %11, %28 : vector<128x1xi32>
    %30 = arith.subf %20, %27 : vector<128x1xf32>
    %cst_12 = arith.constant 0.000000e+00 : f32
    %31 = vector.broadcast %cst_12 : f32 to vector<128x1xf32>
    %32 = arith.select %29, %30, %31 : vector<128x1xi1>, vector<128x1xf32>
    %33 = tpu.iota {dimensions = array<i32: 1>} : vector<1x128xi32>
    %c0_i32_13 = arith.constant 0 : i32
    %34 = vector.broadcast %c0_i32_13 : i32 to vector<1x128xi32>
    %35 = arith.cmpi eq, %33, %34 : vector<1x128xi32>
    %36 = vector.shape_cast %32 : vector<128x1xf32> to vector<1x128x1xf32>
    %cst_14 = arith.constant dense<0.000000e+00> : vector<1xf32>
    %37 = vector.multi_reduction <add>, %36, %cst_14 [1, 2] : vector<1x128x1xf32> to vector<1xf32>
    %38 = vector.shape_cast %37 : vector<1xf32> to vector<1x1x1xf32>
    %39 = vector.extract %38[0, 0, 0] : f32 from vector<1x1x1xf32>
    %cst_15 = arith.constant 0.000000e+00 : f32
    %40 = vector.broadcast %39 : f32 to vector<1x128xf32>
    %41 = vector.broadcast %cst_15 : f32 to vector<1x128xf32>
    %42 = arith.select %35, %40, %41 : vector<1x128xi1>, vector<1x128xf32>
    %c0_16 = arith.constant 0 : index
    %c0_17 = arith.constant 0 : index
    %43 = vector.load %arg5[%c0_16, %c0_17] : memref<1x128xf32, #tpu.memory_space<vmem>>, vector<1x128xf32>
    tpu.vector_store %arg5[%c0_16, %c0_17], %42 {strides = array<i32>} : memref<1x128xf32, #tpu.memory_space<vmem>>, vector<1x128xf32>,
    return
  }
  func.func @transform_0(%arg0: i32) -> (i32, i32) {
    %c0_i32 = arith.constant 0 : i32
    %c0_i32_0 = arith.constant 0 : i32
    return %arg0, %c0_i32 : i32, i32
  }
  func.func @transform_1(%arg0: i32) -> (i32, i32) {
    %c0_i32 = arith.constant 0 : i32
    %c0_i32_0 = arith.constant 0 : i32
    return %arg0, %c0_i32 : i32, i32
  }
  func.func @transform_2(%arg0: i32) -> (i32, i32) {
    %c0_i32 = arith.constant 0 : i32
    %c0_i32_0 = arith.constant 0 : i32
    return %arg0, %c0_i32 : i32, i32
  }
  func.func @transform_3(%arg0: i32) -> (i32, i32) {
    %c0_i32 = arith.constant 0 : i32
    %c0_i32_0 = arith.constant 0 : i32
    return %arg0, %c0_i32 : i32, i32
  }
  func.func @transform_4(%arg0: i32) -> (i32, i32) {
    %c0_i32 = arith.constant 0 : i32
    %c0_i32_0 = arith.constant 0 : i32
    return %arg0, %c0_i32 : i32, i32
  }
}

</mosaic_0001>

<bundles_post_ra>
// kernel: tpu_custom_call.1
= control target key start
LH: loop header
LB: loop body
LE: loop exit
PB: predicated region body
PF: predicated region fallthrough
CT: control target
= control target key end

     0   :  { %vm194_vm0 = vcmask 64512   ;;  %v754_v6 = vmov 0   ;;  %s1402_s0 = inlined_call_operand.vmem [shape: f32[128,32], index: 0, kind: input, shape index: {}]   ;;  %s1403_s1 = inlined_call_operand.vmem [shape: f32[128,8], index: 1, kind: input, shape index: {}]   ;;  %s1404_s2 = inlined_call_operand.vmem [shape: s32[128,1], index: 2, kind: input, shape index: {}]   ;;  %s1405_s3 = inlined_call_operand.vmem [shape: f32[128,32], index: 3, kind: output, shape index: {0}]   ;;  %s1406_s4 = inlined_call_operand.hbm [shape: f32[1,128], index: 4, kind: output, shape index: {1}]  }
   0x1   :  { %v784_v0 = vld [vmem:[%s1403_s1 + $0x10] sm:$0xff]  ;;  %v789_v1 = vld [vmem:[%s1403_s1] sm:$0xff]  ;;  %v794_v2 = vld [vmem:[%s1403_s1 + $0x18] sm:$0xff]  ;;  %633 = vset.pattern.permute.xlu1 %v754_v6  ;;  %632 = vset.pattern.permute.xlu0 %v754_v6 }
   0x2   :  { %v201_v3 = vsel %vm194_vm0, %v784_v0, -inf  ;;  %v195_v4 = vsel %vm194_vm0, %v789_v1, -inf  ;;  %v803_v5 = vld [vmem:[%s1403_s1 + $0x8] sm:$0xff]  ;;  %v204_v7 = vsel %vm194_vm0, %v794_v2, -inf  ;;  %v817_v10 = vld [vmem:[%s1403_s1 + $0x20] sm:$0xff]  ;;  %v826_v13 = vld [vmem:[%s1403_s1 + $0x38] sm:$0xff] }
   0x3   :  { %202 = vmax.xlane.f32.xlu1 %v201_v3  ;;  %196 = vmax.xlane.f32.xlu0 %v195_v4  ;;  %v198_v8 = vsel %vm194_vm0, %v803_v5, -inf  ;;  %v812_v9 = vld [vmem:[%s1403_s1 + $0x28] sm:$0xff]  ;;  %v207_v12 = vsel %vm194_vm0, %v817_v10, -inf  ;;  %v831_v14 = vld [vmem:[%s1403_s1 + $0x30] sm:$0xff]  ;;  %v216_v15 = vsel %vm194_vm0, %v826_v13, -inf }
   0x4   :  { %v210_v11 = vsel %vm194_vm0, %v812_v9, -inf  ;;  %v213_v16 = vsel %vm194_vm0, %v831_v14, -inf }
   0x7   :  { %205 = vmax.xlane.f32.xlu1 %v204_v7  ;;  %199 = vmax.xlane.f32.xlu0 %v198_v8 }
   0xb   :  { %211 = vmax.xlane.f32.xlu1 %v210_v11  ;;  %208 = vmax.xlane.f32.xlu0 %v207_v12 }
   0xc   :  { %10 = vsyncpa [#allocation3], 0  ;;  %v840_v17 = vld [vmem:[%s1403_s1 + $0x48] sm:$0xff]  ;;  %v845_v18 = vld [vmem:[%s1403_s1 + $0x40] sm:$0xff]  ;;  %v387_v63 = vlaneseq  ;;  %s755_s30 = smov [#allocation2]  }
   0xd   :  { %v222_v19 = vsel %vm194_vm0, %v840_v17, -inf  ;;  %v219_v20 = vsel %vm194_vm0, %v845_v18, -inf  ;;  %v854_v21 = vld [vmem:[%s1403_s1 + $0x58] sm:$0xff]  ;;  %v859_v22 = vld [vmem:[%s1403_s1 + $0x50] sm:$0xff]  ;;  %v868_v25 = vld [vmem:[%s1403_s1 + $0x68] sm:$0xff]  ;;  %s618_s5 = sshll.u32 %s755_s30, 4  ;;  %s619_s5 = int_to_ptr.vmem [resolvable:$true] %s618_s5 }
   0xe   :  { %v228_v23 = vsel %vm194_vm0, %v854_v21, -inf  ;;  %v225_v24 = vsel %vm194_vm0, %v859_v22, -inf  ;;  %v873_v26 = vld [vmem:[%s1403_s1 + $0x60] sm:$0xff]  ;;  %v234_v27 = vsel %vm194_vm0, %v868_v25, -inf  ;;  %v882_v29 = vld [vmem:[%s1403_s1 + $0x78] sm:$0xff]  ;;  %v887_v30 = vld [vmem:[%s1403_s1 + $0x70] sm:$0xff]  ;;  %p735_p1 = scmp.lt.s32.totalorder %s619_s5, %s619_s5 }
   0xf   :  { %217 = vmax.xlane.f32.xlu1 %v216_v15  ;;  %214 = vmax.xlane.f32.xlu0 %v213_v16  ;;  %v231_v28 = vsel %vm194_vm0, %v873_v26, -inf  ;;  %v240_v31 = vsel %vm194_vm0, %v882_v29, -inf  ;;  %v237_v32 = vsel %vm194_vm0, %v887_v30, -inf  ;;  %v896_v33 = vld [vmem:[%s1404_s2 + $0x8] sm:$0xff]  ;;  %v902_v34 = vld [vmem:[%s1404_s2 + $0x10] sm:$0xff]  ;;  %v907_v35 = vld [vmem:[%s1404_s2] sm:$0xff] }
  0x10   :  { %v914_v36 = vld [vmem:[%s1404_s2 + $0x18] sm:$0xff]  ;;  %v919_v37 = vld [vmem:[%s1404_s2 + $0x48] sm:$0xff]  ;;  %v926_v38 = vld [vmem:[%s1404_s2 + $0x20] sm:$0xff]  ;;  %v1027_v12 = vand.u32 127, %v387_v63  ;;  %s730_s7 = scalar_lea.vmem %s619_s5, 16  ;;  %s734_s8 = scalar_lea.vmem %s619_s5, 32 }
  0x11   :  { %v931_v39 = vld [vmem:[%s1404_s2 + $0x58] sm:$0xff]  ;;  %v938_v40 = vld [vmem:[%s1404_s2 + $0x28] sm:$0xff]  ;;  %v950_v42 = vld [vmem:[%s1404_s2 + $0x30] sm:$0xff]  ;;  %p731_p0 = scmp.ne.s32.totalorder %s619_s5, %s730_s7  ;;  %p736_p2 = scmp.lt.s32.totalorder %s734_s8, %s730_s7 }
  0x12   :  { %v943_v41 = vld [vmem:[%s1404_s2 + $0x68] sm:$0xff]  ;;  %v955_v43 = vld [vmem:[%s1404_s2 + $0x78] sm:$0xff]  ;;  %v968_v45 = vld [vmem:[%s1404_s2 + $0x40] sm:$0xff] }
  0x13   :  { %223 = vmax.xlane.f32.xlu1 %v222_v19  ;;  %220 = vmax.xlane.f32.xlu0 %v219_v20  ;;  %v962_v44 = vld [vmem:[%s1404_s2 + $0x38] sm:$0xff]  ;;  %v974_v46 = vld [vmem:[%s1404_s2 + $0x50] sm:$0xff]  ;;  %v980_v47 = vld [vmem:[%s1404_s2 + $0x60] sm:$0xff]  ;;  %p737_p3 = por %p736_p2, %p735_p1 }
  0x14   :  { %v986_v48 = vld [vmem:[%s1404_s2 + $0x70] sm:$0xff] }
  0x15   :  { %p738_p4 = pnand %p737_p3, %p731_p0 }
  0x17   :  { %229 = vmax.xlane.f32.xlu1 %v228_v23  ;;  %226 = vmax.xlane.f32.xlu0 %v225_v24 }
  0x1b   :  { %235 = vmax.xlane.f32.xlu1 %v234_v27  ;;  %232 = vmax.xlane.f32.xlu0 %v231_v28 }
  0x1f   :  { %241 = vmax.xlane.f32.xlu1 %v240_v31  ;;  %238 = vmax.xlane.f32.xlu0 %v237_v32 }
  0x30   :  { %393 = vperm.xlu1 %633, %v896_v33  }
  0x34   :  { %396 = vperm.xlu1 %633, %v902_v34  }
  0x35   :  { %390 = vperm.xlu0 %632, %v907_v35  }
  0x38   :  { %399 = vperm.xlu1 %633, %v914_v36  }
  0x39   :  { %417 = vperm.xlu0 %632, %v919_v37  }
  0x3c   :  { %402 = vperm.xlu1 %633, %v926_v38  }
  0x3d   :  { %423 = vperm.xlu0 %632, %v931_v39  }
  0x40   :  { %405 = vperm.xlu1 %633, %v938_v40  }
  0x41   :  { %429 = vperm.xlu0 %632, %v943_v41  }
  0x44   :  { %408 = vperm.xlu1 %633, %v950_v42  }
  0x45   :  { %435 = vperm.xlu0 %632, %v955_v43  }
  0x48   :  { %411 = vperm.xlu1 %633, %v962_v44  }
  0x4c   :  { %414 = vperm.xlu1 %633, %v968_v45  }
  0x50   :  { %420 = vperm.xlu1 %633, %v974_v46  }
  0x54   :  { %426 = vperm.xlu1 %633, %v980_v47  }
  0x58   :  { %432 = vperm.xlu1 %633, %v986_v48  }
  0x90   :  { %v989_v49 = vpop.xlane.xlu1 %202  ;;  %v991_v50 = vpop.xlane.xlu0 %196 }
  0x91   :  { %v243_v61 = vsub.f32 %v789_v1, %v991_v50  ;;  %v245_v16 = vsub.f32 %v784_v0, %v989_v49 }
  0x93   :  { %v259_v3 = vmul.f32 1.442695, %v243_v61  ;;  %v263_v32 = vmul.f32 1.442695, %v245_v16 }
  0x94   :  { %v993_v51 = vpop.xlane.xlu1 %205  ;;  %v995_v52 = vpop.xlane.xlu0 %199 }
  0x95   :  { %v246_v4 = vsub.f32 %v794_v2, %v993_v51  ;;  %v244_v7 = vsub.f32 %v803_v5, %v995_v52  ;;  %634 = vpow2.f32 %v259_v3 }
  0x97   :  { %v265_v15 = vmul.f32 1.442695, %v246_v4  ;;  %v261_v19 = vmul.f32 1.442695, %v244_v7 }
  0x98   :  { %v997_v53 = vpop.xlane.xlu1 %211  ;;  %v999_v54 = vpop.xlane.xlu0 %208 }
  0x99   :  { %v248_v11 = vsub.f32 %v812_v9, %v997_v53  ;;  %636 = vpow2.f32 %v265_v15  ;;  %v247_v3 = vsub.f32 %v817_v10, %v999_v54 }
  0x9a   :  { %638 = vpow2.f32 %v261_v19 }
  0x9b   :  { %v269_v24 = vmul.f32 1.442695, %v248_v11 }
  0x9c   :  { %v1001_v55 = vpop.xlane.xlu1 %217  ;;  %v1003_v56 = vpop.xlane.xlu0 %214 }
  0x9d   :  { %v250_v27 = vsub.f32 %v826_v13, %v1001_v55  ;;  %640 = vpow2.f32 %v269_v24  ;;  %v267_v24 = vmul.f32 1.442695, %v247_v3 }
  0x9e   :  { %642 = vpow2.f32 %v263_v32 }
  0x9f   :  { %v273_v4 = vmul.f32 1.442695, %v250_v27  ;;  %v635_v19 = vpop.eup %634  ;;  %v249_v27 = vsub.f32 %v831_v14, %v1003_v56 }
  0xa0   :  { %v1005_v57 = vpop.xlane.xlu1 %223  ;;  %v1007_v58 = vpop.xlane.xlu0 %220 }
  0xa1   :  { %v252_v7 = vsub.f32 %v840_v17, %v1005_v57  ;;  %644 = vpow2.f32 %v273_v4  ;;  %v271_v32 = vmul.f32 1.442695, %v249_v27  ;;  %v251_v3 = vsub.f32 %v845_v18, %v1007_v58 }
  0xa2   :  { %646 = vpow2.f32 %v267_v24 }
  0xa4   :  { %v1009_v59 = vpop.xlane.xlu1 %229  ;;  %v1011_v60 = vpop.xlane.xlu0 %226 }
  0xa8   :  { %v1015_v62 = vpop.xlane.xlu1 %235  ;;  %v1019_v6 = vpop.xlane.xlu0 %232 }
  0xa9   :  { %v255_v27 = vsub.f32 %v873_v26, %v1019_v6 }
  0xac   :  { %v1023_v8 = vpop.xlane.xlu1 %241  ;;  %v1031_v20 = vpop.xlane.xlu0 %238 }
  0xb0   :  { %v394_v23 = vpop.permute.xlu1 %393 }
  0xb1   :  { %vm438_vm1 = vcmp.eq.s32.totalorder %v1027_v12, %v394_v23 }
  0xb2   :  { %v454_v28 = vsel %vm438_vm1, %v803_v5, 0.0 }
  0xb3   :  { %v472_v31 = vsel %vm194_vm0, %v454_v28, 0.0  ;;  %v277_v28 = vmul.f32 1.442695, %v252_v7 }
  0xb4   :  { %v397_v61 = vpop.permute.xlu1 %396  ;;  %473 = vadd.xlane.f32.xlu0 %v472_v31  ;;  %v391_v63 = vpop.permute.xlu0 %390 }
  0xb5   :  { %vm439_vm2 = vcmp.eq.s32.totalorder %v1027_v12, %v397_v61  ;;  %vm437_vm3 = vcmp.eq.s32.totalorder %v1027_v12, %v391_v63  ;;  %v291_v61 = vsel %vm194_vm0, %v635_v19, 0.0  ;;  %v637_v63 = vpop.eup %636  ;;  %648 = vpow2.f32 %v277_v28 }
  0xb6   :  { %v455_v5 = vsel %vm439_vm2, %v784_v0, 0.0  ;;  %v453_v11 = vsel %vm437_vm3, %v789_v1, 0.0  ;;  %v253_v0 = vsub.f32 %v859_v22, %v1011_v60  ;;  %v639_v4 = vpop.eup %638  ;;  %v300_v19 = vsel %vm194_vm0, %v637_v63, 0.0 }
  0xb7   :  { %v475_v15 = vsel %vm194_vm0, %v455_v5, 0.0  ;;  %v469_v16 = vsel %vm194_vm0, %v453_v11, 0.0  ;;  %650 = vpow2.f32 %v271_v32  ;;  %v283_v63 = vmul.f32 1.442695, %v255_v27 }
  0xb8   :  { %v400_v23 = vpop.permute.xlu1 %399  ;;  %476 = vadd.xlane.f32.xlu0 %v475_v15  ;;  %470 = vadd.xlane.f32.xlu1 %v469_v16  ;;  %v279_v7 = vmul.f32 1.442695, %v253_v0  ;;  %v641_v15 = vpop.eup %640  ;;  %v294_v0 = vsel %vm194_vm0, %v639_v4, 0.0  ;;  %vm49_vm2 = vcmask 261120   ;;  %vm518_vm3 = vcmp.ge.s32.totalorder %v896_v33, 0 }
  0xb9   :  { %vm440_vm4 = vcmp.eq.s32.totalorder %v1027_v12, %v400_v23  ;;  %v275_v23 = vmul.f32 1.442695, %v251_v3 }
  0xba   :  { %v456_v1 = vsel %vm440_vm4, %v794_v2, 0.0  ;;  %v254_v2 = vsub.f32 %v854_v21, %v1009_v59  ;;  %652 = vpow2.f32 %v279_v7  ;;  %vm566_vm4 = vcmask 7168  }
  0xbb   :  { %v478_v31 = vsel %vm194_vm0, %v456_v1, 0.0  ;;  %v643_v1 = vpop.eup %642  ;;  %654 = vpow2.f32 %v275_v23 }
  0xbc   :  { %v403_v5 = vpop.permute.xlu1 %402  ;;  %479 = vadd.xlane.f32.xlu0 %v478_v31  ;;  %292 = vadd.xlane.f32.xlu1 %v291_v61  ;;  %v281_v24 = vmul.f32 1.442695, %v254_v2  ;;  %v645_v31 = vpop.eup %644  ;;  %v256_v61 = vsub.f32 %v868_v25, %v1015_v62  ;;  %v297_v32 = vsel %vm194_vm0, %v643_v1, 0.0 }
  0xbd   :  { %vm441_vm5 = vcmp.eq.s32.totalorder %v1027_v12, %v403_v5  ;;  %v647_v5 = vpop.eup %646  ;;  %v312_v3 = vsel %vm194_vm0, %v645_v31, 0.0 }
  0xbe   :  { %v457_v11 = vsel %vm441_vm5, %v817_v10, 0.0  ;;  %v306_v10 = vsel %vm194_vm0, %v641_v15, 0.0  ;;  %656 = vpow2.f32 %v281_v24  ;;  %v285_v4 = vmul.f32 1.442695, %v256_v61 }
  0xbf   :  { %v481_v16 = vsel %vm194_vm0, %v457_v11, 0.0  ;;  %v649_v2 = vpop.eup %648  ;;  %658 = vpow2.f32 %v283_v63  ;;  %v257_v11 = vsub.f32 %v887_v30, %v1031_v20  ;;  %v258_v24 = vsub.f32 %v882_v29, %v1023_v8 }
  0xc0   :  { %482 = vadd.xlane.f32.xlu0 %v481_v16  ;;  %301 = vadd.xlane.f32.xlu1 %v300_v19  ;;  %v406_v28 = vpop.permute.xlu1 %405  ;;  %v303_v16 = vsel %vm194_vm0, %v647_v5, 0.0  ;;  %v318_v19 = vsel %vm194_vm0, %v649_v2, 0.0  ;;  %660 = vpow2.f32 %v285_v4  ;;  %vm519_vm5 = vcmp.ge.s32.totalorder %v902_v34, 0 }
  0xc1   :  { %v651_v15 = vpop.eup %650  ;;  %v287_v27 = vmul.f32 1.442695, %v257_v11  ;;  %vm442_vm6 = vcmp.eq.s32.totalorder %v1027_v12, %v406_v28  ;;  %v289_v63 = vmul.f32 1.442695, %v258_v24 }
  0xc2   :  { %v458_v4 = vsel %vm442_vm6, %v812_v9, 0.0  ;;  %vm520_vm6 = vcmp.ge.s32.totalorder %v914_v36, 0 }
  0xc3   :  { %662 = vpow2.f32 %v287_v27  ;;  %v484_v11 = vsel %vm194_vm0, %v458_v4, 0.0 }
  0xc4   :  { %295 = vadd.xlane.f32.xlu0 %v294_v0  ;;  %307 = vadd.xlane.f32.xlu1 %v306_v10  ;;  %v409_v7 = vpop.permute.xlu1 %408  ;;  %v653_v23 = vpop.eup %652  ;;  %v309_v10 = vsel %vm194_vm0, %v651_v15, 0.0  ;;  %664 = vpow2.f32 %v289_v63 }
  0xc5   :  { %v655_v0 = vpop.eup %654  ;;  %v321_v31 = vsel %vm194_vm0, %v653_v23, 0.0  ;;  %vm443_vm7 = vcmp.eq.s32.totalorder %v1027_v12, %v409_v7 }
  0xc6   :  { %v315_v5 = vsel %vm194_vm0, %v655_v0, 0.0 }
  0xc8   :  { %298 = vadd.xlane.f32.xlu0 %v297_v32  ;;  %313 = vadd.xlane.f32.xlu1 %v312_v3  ;;  %v412_v1 = vpop.permute.xlu1 %411  ;;  %v657_v61 = vpop.eup %656 }
  0xc9   :  { %v324_v32 = vsel %vm194_vm0, %v657_v61, 0.0  ;;  %v659_v3 = vpop.eup %658  ;;  %vm444_vm8 = vcmp.eq.s32.totalorder %v1027_v12, %v412_v1 }
  0xca   :  { %v327_v15 = vsel %vm194_vm0, %v659_v3, 0.0  ;;  %v661_v28 = vpop.eup %660  ;;  %v460_v7 = vsel %vm444_vm8, %v826_v13, 0.0  ;;  %vm522_vm8 = vcmp.ge.s32.totalorder %v938_v40, 0 }
  0xcb   :  { %v330_v9 = vsel %vm194_vm0, %v661_v28, 0.0 }
  0xcc   :  { %304 = vadd.xlane.f32.xlu0 %v303_v16  ;;  %319 = vadd.xlane.f32.xlu1 %v318_v19  ;;  %v415_v2 = vpop.permute.xlu1 %414  ;;  %v418_v16 = vpop.permute.xlu0 %417  ;;  %v459_v19 = vsel %vm443_vm7, %v831_v14, 0.0  ;;  %vm521_vm7 = vcmp.ge.s32.totalorder %v926_v38, 0 }
  0xcd   :  { %v487_v24 = vsel %vm194_vm0, %v459_v19, 0.0  ;;  %v663_v27 = vpop.eup %662  ;;  %vm445_vm9 = vcmp.eq.s32.totalorder %v1027_v12, %v415_v2  ;;  %vm446_vm10 = vcmp.eq.s32.totalorder %v1027_v12, %v418_v16 }
  0xce   :  { %v665_v14 = vpop.eup %664  ;;  %v461_v1 = vsel %vm445_vm9, %v845_v18, 0.0  ;;  %v462_v3 = vsel %vm446_vm10, %v840_v17, 0.0  ;;  %vm523_vm9 = vcmp.ge.s32.totalorder %v950_v42, 0  ;;  %vm524_vm10 = vcmp.ge.s32.totalorder %v962_v44, 0 }
  0xcf   :  { %v493_v63 = vsel %vm194_vm0, %v461_v1, 0.0  ;;  %v336_v13 = vsel %vm194_vm0, %v665_v14, 0.0  ;;  %v496_v4 = vsel %vm194_vm0, %v462_v3, 0.0  ;;  %v1146_v14 = vld [vmem:[%s1402_s0 + $0x30] sm:$0xff] }
  0xd0   :  { %310 = vadd.xlane.f32.xlu0 %v309_v10  ;;  %322 = vadd.xlane.f32.xlu1 %v321_v31  ;;  %v421_v23 = vpop.permute.xlu1 %420  ;;  %v424_v0 = vpop.permute.xlu0 %423  ;;  %v490_v10 = vsel %vm194_vm0, %v460_v7, 0.0  ;;  %v333_v31 = vsel %vm194_vm0, %v663_v27, 0.0  ;;  %v1130_v27 = vld [vmem:[%s1402_s0 + $0x10] sm:$0xff] }
  0xd1   :  { %vm447_vm11 = vcmp.eq.s32.totalorder %v1027_v12, %v421_v23  ;;  %vm448_vm12 = vcmp.eq.s32.totalorder %v1027_v12, %v424_v0  ;;  %v1138_v0 = vld [vmem:[%s1402_s0 + $0x20] sm:$0xff] }
  0xd4   :  { %316 = vadd.xlane.f32.xlu0 %v315_v5  ;;  %325 = vadd.xlane.f32.xlu1 %v324_v32  ;;  %v427_v61 = vpop.permute.xlu1 %426  ;;  %v430_v5 = vpop.permute.xlu0 %429  ;;  %v463_v32 = vsel %vm447_vm11, %v859_v22, 0.0  ;;  %vm525_vm11 = vcmp.ge.s32.totalorder %v968_v45, 0 }
  0xd5   :  { %vm449_vm13 = vcmp.eq.s32.totalorder %v1027_v12, %v427_v61  ;;  %v499_v2 = vsel %vm194_vm0, %v463_v32, 0.0  ;;  %vm450_vm14 = vcmp.eq.s32.totalorder %v1027_v12, %v430_v5  ;;  %v39_v61 = vmul.f32 %v1146_v14, %v1146_v14  ;;  %v1162_v32 = vld [vmem:[%s1402_s0 + $0x50] sm:$0xff] }
  0xd6   :  { %v466_v19 = vsel %vm450_vm14, %v868_v25, 0.0  ;;  %v43_v3 = vmul.f32 %v1162_v32, %v1162_v32  ;;  %vm528_vm14 = vcmp.ge.s32.totalorder %v931_v39, 0 }
  0xd7   :  { %v68_v1 = vsel %vm49_vm2, %v39_v61, 0.0 }
  0xd8   :  { %485 = vadd.xlane.f32.xlu0 %v484_v11  ;;  %328 = vadd.xlane.f32.xlu1 %v327_v15  ;;  %v433_v18 = vpop.permute.xlu1 %432  ;;  %v465_v11 = vsel %vm449_vm13, %v873_v26, 0.0  ;;  %v464_v15 = vsel %vm448_vm12, %v854_v21, 0.0  ;;  %v436_v17 = vpop.permute.xlu0 %435  ;;  %v508_v21 = vsel %vm194_vm0, %v466_v19, 0.0  ;;  %vm526_vm12 = vcmp.ge.s32.totalorder %v919_v37, 0 }
  0xd9   :  { %vm451_vm15 = vcmp.eq.s32.totalorder %v1027_v12, %v433_v18  ;;  %v505_v22 = vsel %vm194_vm0, %v465_v11, 0.0  ;;  %v502_v28 = vsel %vm194_vm0, %v464_v15, 0.0  ;;  %vm452_vm1 = vcmp.eq.s32.totalorder %v1027_v12, %v436_v17  ;;  %v1178_v15 = vld [vmem:[%s1402_s0 + $0x70] sm:$0xff] }
  0xda   :  { %v467_v16 = vsel %vm451_vm15, %v887_v30, 0.0  ;;  %v468_v23 = vsel %vm452_vm1, %v882_v29, 0.0  ;;  %v1122_v30 = vld [vmem:[%s1402_s0] sm:$0xff]  ;;  %v35_v29 = vmul.f32 %v1130_v27, %v1130_v27  ;;  %v80_v18 = vsel %vm49_vm2, %v43_v3, 0.0 }
  0xdb   :  { %v511_v26 = vsel %vm194_vm0, %v467_v16, 0.0  ;;  %v33_v25 = vmul.f32 %v1122_v30, %v1122_v30  ;;  %v47_v17 = vmul.f32 %v1178_v15, %v1178_v15  ;;  %vm527_vm13 = vcmp.ge.s32.totalorder %v974_v46, 0 }
  0xdc   :  { %488 = vadd.xlane.f32.xlu0 %v487_v24  ;;  %331 = vadd.xlane.f32.xlu1 %v330_v9  ;;  %v514_v24 = vsel %vm194_vm0, %v468_v23, 0.0  ;;  %v56_v7 = vsel %vm49_vm2, %v35_v29, 0.0  ;;  %vm517_vm0 = vcmp.ge.s32.totalorder %v907_v35, 0  ;;  %vm529_vm15 = vcmp.ge.s32.totalorder %v980_v47, 0 }
  0xdd   :  { %v50_v9 = vsel %vm49_vm2, %v33_v25, 0.0  ;;  %vm530_vm1 = vcmp.ge.s32.totalorder %v943_v41, 0 }
  0xe0   :  { %491 = vadd.xlane.f32.xlu0 %v490_v10  ;;  %334 = vadd.xlane.f32.xlu1 %v333_v31  ;;  %v37_v10 = vmul.f32 %v1138_v0, %v1138_v0 }
  0xe2   :  { %v62_v31 = vsel %vm49_vm2, %v37_v10, 0.0 }
  0xe4   :  { %494 = vadd.xlane.f32.xlu0 %v493_v63  ;;  %337 = vadd.xlane.f32.xlu1 %v336_v13  ;;  %v1154_v63 = vld [vmem:[%s1402_s0 + $0x40] sm:$0xff] }
  0xe5   :  { %v41_v13 = vmul.f32 %v1154_v63, %v1154_v63 }
  0xe7   :  { %v74_v5 = vsel %vm49_vm2, %v41_v13, 0.0 }
  0xe8   :  { %500 = vadd.xlane.f32.xlu0 %v499_v2  ;;  %497 = vadd.xlane.f32.xlu1 %v496_v4  ;;  %v1170_v2 = vld [vmem:[%s1402_s0 + $0x60] sm:$0xff] }
  0xe9   :  { %v45_v4 = vmul.f32 %v1170_v2, %v1170_v2 }
  0xeb   :  { %v86_v11 = vsel %vm49_vm2, %v45_v4, 0.0 }
  0xec   :  { %506 = vadd.xlane.f32.xlu0 %v505_v22  ;;  %503 = vadd.xlane.f32.xlu1 %v502_v28  ;;  %v92_v22 = vsel %vm49_vm2, %v47_v17, 0.0 }
  0xf0   :  { %512 = vadd.xlane.f32.xlu0 %v511_v26  ;;  %509 = vadd.xlane.f32.xlu1 %v508_v21 }
  0xf4   :  { %515 = vadd.xlane.f32.xlu1 %v514_v24 }
  0xf8   :  { %51 = vadd.xlane.f32.xlu1 %v50_v9 }
  0xfc   :  { %57 = vadd.xlane.f32.xlu1 %v56_v7 }
 0x100   :  { %63 = vadd.xlane.f32.xlu1 %v62_v31 }
 0x104   :  { %69 = vadd.xlane.f32.xlu1 %v68_v1 }
 0x108   :  { %75 = vadd.xlane.f32.xlu1 %v74_v5 }
 0x10c   :  { %81 = vadd.xlane.f32.xlu1 %v80_v18 }
 0x110   :  { %87 = vadd.xlane.f32.xlu1 %v86_v11 }
 0x114   :  { %93 = vadd.xlane.f32.xlu1 %v92_v22 }
 0x141   :  { %v474_v28 = vpop.xlane.xlu0 %473 }
 0x145   :  { %v471_v16 = vpop.xlane.xlu1 %470  ;;  %v1183_v19 = vpop.xlane.xlu0 %476 }
 0x149   :  { %v293_v26 = vpop.xlane.xlu1 %292  ;;  %v480_v21 = vpop.xlane.xlu0 %479 }
 0x14a   :  { %666 = vlog2.f32 %v293_v26 }
 0x14d   :  { %v302_v23 = vpop.xlane.xlu1 %301  ;;  %v1185_v24 = vpop.xlane.xlu0 %482 }
 0x14e   :  { %668 = vlog2.f32 %v302_v23 }
 0x151   :  { %v308_v25 = vpop.xlane.xlu1 %307  ;;  %v296_v9 = vpop.xlane.xlu0 %295 }
 0x152   :  { %670 = vlog2.f32 %v296_v9 }
 0x153   :  { %672 = vlog2.f32 %v308_v25 }
 0x154   :  { %v667_v29 = vpop.eup %666 }
 0x155   :  { %v314_v7 = vpop.xlane.xlu1 %313  ;;  %v299_v10 = vpop.xlane.xlu0 %298  ;;  %v340_v31 = vmul.f32 0.6931472, %v667_v29 }
 0x156   :  { %674 = vlog2.f32 %v299_v10 }
 0x157   :  { %v371_v5 = vadd.f32 %v340_v31, %v991_v50 }
 0x158   :  { %v669_v61 = vpop.eup %668 }
 0x159   :  { %v320_v1 = vpop.xlane.xlu1 %319  ;;  %v305_v13 = vpop.xlane.xlu0 %304  ;;  %v346_v3 = vmul.f32 0.6931472, %v669_v61  ;;  %v533_v22 = vsub.f32 %v371_v5, %v471_v16 }
 0x15a   :  { %676 = vlog2.f32 %v305_v13 }
 0x15b   :  { %678 = vlog2.f32 %v314_v7  ;;  %v374_v23 = vadd.f32 %v346_v3, %v993_v51  ;;  %v549_v10 = vsel %vm517_vm0, %v533_v22, 0.0  ;;  %vm531_vm0 = vcmp.ge.s32.totalorder %v986_v48, 0 }
 0x15c   :  { %v671_v18 = vpop.eup %670  ;;  %v567_v33 = vsel %vm566_vm4, %v549_v10, 0.0 }
 0x15d   :  { %v323_v4 = vpop.xlane.xlu1 %322  ;;  %v311_v11 = vpop.xlane.xlu0 %310  ;;  %v342_v26 = vmul.f32 0.6931472, %v671_v18  ;;  %v536_v35 = vsub.f32 %v374_v23, %v480_v21 }
 0x15e   :  { %v673_v17 = vpop.eup %672  ;;  %680 = vlog2.f32 %v311_v11 }
 0x15f   :  { %v372_v25 = vadd.f32 %v342_v26, %v995_v52  ;;  %v350_v50 = vmul.f32 0.6931472, %v673_v17  ;;  %682 = vlog2.f32 %v320_v1  ;;  %v552_v21 = vsel %vm520_vm6, %v536_v35, 0.0 }
 0x160   :  { %v675_v9 = vpop.eup %674  ;;  %684 = vlog2.f32 %v323_v4  ;;  %v572_v34 = vsel %vm566_vm4, %v552_v21, 0.0 }
 0x161   :  { %v326_v29 = vpop.xlane.xlu1 %325  ;;  %v317_v7 = vpop.xlane.xlu0 %316  ;;  %v534_v31 = vsub.f32 %v372_v25, %v474_v28  ;;  %v344_v61 = vmul.f32 0.6931472, %v675_v9  ;;  %v376_v28 = vadd.f32 %v350_v50, %v997_v53 }
 0x162   :  { %686 = vlog2.f32 %v317_v7 }
 0x163   :  { %v550_v51 = vsel %vm518_vm3, %v534_v31, 0.0  ;;  %v373_v52 = vadd.f32 %v344_v61, %v989_v49  ;;  %688 = vlog2.f32 %v326_v29  ;;  %vm532_vm3 = vcmp.ge.s32.totalorder %v955_v43, 0 }
 0x164   :  { %v677_v16 = vpop.eup %676  ;;  %v568_v1 = vsel %vm566_vm4, %v550_v51, 0.0 }
 0x165   :  { %v329_v13 = vpop.xlane.xlu1 %328  ;;  %v486_v5 = vpop.xlane.xlu0 %485  ;;  %v569_v18 = vadd.f32 %v568_v1, %v567_v33  ;;  %v535_v4 = vsub.f32 %v373_v52, %v1183_v19  ;;  %v348_v11 = vmul.f32 0.6931472, %v677_v16 }
 0x166   :  { %v679_v3 = vpop.eup %678  ;;  %690 = vlog2.f32 %v329_v13  ;;  %v538_v22 = vsub.f32 %v376_v28, %v486_v5 }
 0x167   :  { %v551_v49 = vsel %vm519_vm5, %v535_v4, 0.0  ;;  %v375_v17 = vadd.f32 %v348_v11, %v999_v54  ;;  %v354_v53 = vmul.f32 0.6931472, %v679_v3 }
 0x168   :  { %v681_v26 = vpop.eup %680  ;;  %v570_v23 = vsel %vm566_vm4, %v551_v49, 0.0  ;;  %v554_v31 = vsel %vm522_vm8, %v538_v22, 0.0 }
 0x169   :  { %v332_v19 = vpop.xlane.xlu1 %331  ;;  %v489_v25 = vpop.xlane.xlu0 %488  ;;  %v537_v9 = vsub.f32 %v375_v17, %v1185_v24  ;;  %v352_v36 = vmul.f32 0.6931472, %v681_v26  ;;  %v571_v50 = vadd.f32 %v570_v23, %v569_v18  ;;  %v378_v35 = vadd.f32 %v354_v53, %v1001_v55 }
 0x16a   :  { %v683_v29 = vpop.eup %682  ;;  %692 = vlog2.f32 %v332_v19  ;;  %v576_v28 = vsel %vm566_vm4, %v554_v31, 0.0 }
 0x16b   :  { %v685_v54 = vpop.eup %684  ;;  %v553_v7 = vsel %vm521_vm7, %v537_v9, 0.0  ;;  %v573_v10 = vadd.f32 %v572_v34, %v571_v50  ;;  %v377_v38 = vadd.f32 %v352_v36, %v1003_v56  ;;  %v358_v13 = vmul.f32 0.6931472, %v683_v29 }
 0x16c   :  { %v687_v40 = vpop.eup %686  ;;  %v574_v61 = vsel %vm566_vm4, %v553_v7, 0.0  ;;  %v360_v3 = vmul.f32 0.6931472, %v685_v54 }
 0x16d   :  { %v335_v24 = vpop.xlane.xlu1 %334  ;;  %v492_v51 = vpop.xlane.xlu0 %491  ;;  %v356_v52 = vmul.f32 0.6931472, %v687_v40  ;;  %v575_v16 = vadd.f32 %v574_v61, %v573_v10  ;;  %v539_v33 = vsub.f32 %v377_v38, %v489_v25 }
 0x16e   :  { %694 = vlog2.f32 %v335_v24  ;;  %v689_v1 = vpop.eup %688  ;;  %v540_v56 = vsub.f32 %v378_v35, %v492_v51  ;;  %v381_v45 = vadd.f32 %v360_v3, %v1011_v60 }
 0x16f   :  { %v577_v18 = vadd.f32 %v576_v28, %v575_v16  ;;  %v555_v4 = vsel %vm523_vm9, %v539_v33, 0.0  ;;  %v379_v11 = vadd.f32 %v356_v52, %v1007_v58  ;;  %v362_v23 = vmul.f32 0.6931472, %v689_v1 }
 0x170   :  { %v691_v5 = vpop.eup %690  ;;  %v578_v55 = vsel %vm566_vm4, %v555_v4, 0.0  ;;  %v556_v21 = vsel %vm524_vm10, %v540_v56, 0.0  ;;  %v380_v58 = vadd.f32 %v358_v13, %v1005_v57 }
 0x171   :  { %v338_v49 = vpop.xlane.xlu1 %337  ;;  %v495_v17 = vpop.xlane.xlu0 %494  ;;  %v579_v22 = vadd.f32 %v578_v55, %v577_v18  ;;  %v580_v26 = vsel %vm566_vm4, %v556_v21, 0.0  ;;  %v364_v19 = vmul.f32 0.6931472, %v691_v5  ;;  %v382_v54 = vadd.f32 %v362_v23, %v1009_v59 }
 0x172   :  { %696 = vlog2.f32 %v338_v49  ;;  %v541_v53 = vsub.f32 %v379_v11, %v495_v17  ;;  %v1246_v17 = vld [vmem:[%s1402_s0 + $0x8] sm:$0xff] }
 0x173   :  { %v581_v42 = vadd.f32 %v580_v26, %v579_v22  ;;  %v383_v7 = vadd.f32 %v364_v19, %v1019_v6  ;;  %v34_v23 = vmul.f32 %v1246_v17, %v1246_v17  ;;  %v1255_v19 = vld [vmem:[%s1402_s0 + $0x18] sm:$0xff] }
 0x174   :  { %v557_v25 = vsel %vm525_vm11, %v541_v53, 0.0  ;;  %v693_v9 = vpop.eup %692 }
 0x175   :  { %v582_v44 = vsel %vm566_vm4, %v557_v25, 0.0  ;;  %v498_v36 = vpop.xlane.xlu1 %497  ;;  %v501_v50 = vpop.xlane.xlu0 %500  ;;  %v366_v31 = vmul.f32 0.6931472, %v693_v9  ;;  %v36_v25 = vmul.f32 %v1255_v19, %v1255_v19 }
 0x176   :  { %v542_v29 = vsub.f32 %v380_v58, %v498_v36  ;;  %v543_v34 = vsub.f32 %v381_v45, %v501_v50  ;;  %v583_v57 = vadd.f32 %v582_v44, %v581_v42  ;;  %v53_v42 = vsel %vm49_vm2, %v34_v23, 0.0  ;;  %v1263_v58 = vld [vmem:[%s1402_s0 + $0x28] sm:$0xff]  ;;  %v1271_v44 = vld [vmem:[%s1402_s0 + $0x38] sm:$0xff] }
 0x177   :  { %v384_v39 = vadd.f32 %v366_v31, %v1015_v62  ;;  %v59_v45 = vsel %vm49_vm2, %v36_v25, 0.0  ;;  %v38_v9 = vmul.f32 %v1263_v58, %v1263_v58  ;;  %v40_v50 = vmul.f32 %v1271_v44, %v1271_v44 }
 0x178   :  { %v695_v10 = vpop.eup %694  ;;  %v558_v38 = vsel %vm526_vm12, %v542_v29, 0.0  ;;  %v559_v60 = vsel %vm527_vm13, %v543_v34, 0.0  ;;  %v1279_v29 = vld [vmem:[%s1402_s0 + $0x48] sm:$0xff] }
 0x179   :  { %v368_v37 = vmul.f32 0.6931472, %v695_v10  ;;  %v584_v46 = vsel %vm566_vm4, %v558_v38, 0.0  ;;  %v504_v40 = vpop.xlane.xlu1 %503  ;;  %v507_v61 = vpop.xlane.xlu0 %506  ;;  %v586_v59 = vsel %vm566_vm4, %v559_v60, 0.0  ;;  %v65_v36 = vsel %vm49_vm2, %v38_v9, 0.0 }
 0x17a   :  { %v585_v24 = vadd.f32 %v584_v46, %v583_v57  ;;  %v544_v35 = vsub.f32 %v382_v54, %v504_v40  ;;  %v545_v51 = vsub.f32 %v383_v7, %v507_v61  ;;  %v71_v34 = vsel %vm49_vm2, %v40_v50, 0.0  ;;  %v1287_v7 = vld [vmem:[%s1402_s0 + $0x58] sm:$0xff]  ;;  %v1295_v57 = vld [vmem:[%s1402_s0 + $0x68] sm:$0xff] }
 0x17b   :  { %v385_v6 = vadd.f32 %v368_v37, %v1031_v20  ;;  %v42_v54 = vmul.f32 %v1279_v29, %v1279_v29  ;;  %v44_v31 = vmul.f32 %v1287_v7, %v1287_v7  ;;  %v46_v60 = vmul.f32 %v1295_v57, %v1295_v57  ;;  %v1303_v37 = vld [vmem:[%s1402_s0 + $0x78] sm:$0xff] }
 0x17c   :  { %v697_v52 = vpop.eup %696  ;;  %v587_v16 = vadd.f32 %v586_v59, %v585_v24  ;;  %v560_v33 = vsel %vm528_vm14, %v544_v35, 0.0  ;;  %v561_v1 = vsel %vm529_vm15, %v545_v51, 0.0  ;;  %v48_v40 = vmul.f32 %v1303_v37, %v1303_v37 }
 0x17d   :  { %v370_v47 = vmul.f32 0.6931472, %v697_v52  ;;  %v588_v13 = vsel %vm566_vm4, %v560_v33, 0.0  ;;  %v510_v28 = vpop.xlane.xlu1 %509  ;;  %v513_v56 = vpop.xlane.xlu0 %512  ;;  %v590_v20 = vsel %vm566_vm4, %v561_v1, 0.0  ;;  %v77_v10 = vsel %vm49_vm2, %v42_v54, 0.0 }
 0x17e   :  { %v589_v5 = vadd.f32 %v588_v13, %v587_v16  ;;  %v546_v3 = vsub.f32 %v384_v39, %v510_v28  ;;  %v547_v18 = vsub.f32 %v385_v6, %v513_v56  ;;  %v83_v38 = vsel %vm49_vm2, %v44_v31, 0.0 }
 0x17f   :  { %v386_v4 = vadd.f32 %v370_v47, %v1023_v8  ;;  %v89_v46 = vsel %vm49_vm2, %v46_v60, 0.0  ;;  %v95_v61 = vsel %vm49_vm2, %v48_v40, 0.0 }
 0x180   :  { %v591_v11 = vadd.f32 %v590_v20, %v589_v5  ;;  %v562_v55 = vsel %vm530_vm1, %v546_v3, 0.0  ;;  %v563_v21 = vsel %vm531_vm0, %v547_v18, 0.0 }
 0x181   :  { %v592_v41 = vsel %vm566_vm4, %v562_v55, 0.0  ;;  %v516_v48 = vpop.xlane.xlu1 %515  ;;  %v594_v22 = vsel %vm566_vm4, %v563_v21, 0.0 }
 0x182   :  { %v593_v62 = vadd.f32 %v592_v41, %v591_v11  ;;  %v548_v49 = vsub.f32 %v386_v4, %v516_v48 }
 0x184   :  { %v564_v26 = vsel %vm532_vm3, %v548_v49, 0.0  ;;  %v595_v53 = vadd.f32 %v594_v22, %v593_v62 }
 0x185   :  { %v596_v8 = vsel %vm566_vm4, %v564_v26, 0.0  ;;  %v52_v24 = vpop.xlane.xlu1 %51  ;;  %vm565_vm4 = vcmp.eq.s32.totalorder %v1027_v12, 0 }
 0x186   :  { %v597_v43 = vadd.f32 %v596_v8, %v595_v53  ;;  %v98_v35 = vmax.f32 %v52_v24, 1e-24 }
 0x188   :  { %598 = vadd.xlane.f32.xlu0 %v597_v43  ;;  %698 = vrsqrt.f32 %v98_v35 }
 0x189   :  { %v58_v51 = vpop.xlane.xlu1 %57 }
 0x18a   :  { %v100_v59 = vmax.f32 %v58_v51, 1e-24 }
 0x18c   :  { %54 = vadd.xlane.f32.xlu0 %v53_v42  ;;  %700 = vrsqrt.f32 %v100_v59 }
 0x18d   :  { %v64_v6 = vpop.xlane.xlu1 %63 }
 0x18e   :  { %v102_v52 = vmax.f32 %v64_v6, 1e-24 }
 0x190   :  { %60 = vadd.xlane.f32.xlu0 %v59_v45  ;;  %702 = vrsqrt.f32 %v102_v52 }
 0x191   :  { %v70_v16 = vpop.xlane.xlu1 %69 }
 0x192   :  { %v699_v33 = vpop.eup %698  ;;  %v104_v1 = vmax.f32 %v70_v16, 1e-24 }
 0x193   :  { %v130_v39 = vmul.f32 %v699_v33, %v1122_v30 }
 0x194   :  { %66 = vadd.xlane.f32.xlu0 %v65_v36  ;;  %704 = vrsqrt.f32 %v104_v1 }
 0x195   :  { %146 = vst.msk [vmem:[%s1405_s3] sm:$0xff] %vm49_vm2, %v130_v39  ;;  %v76_v47 = vpop.xlane.xlu1 %75 }
 0x196   :  { %v701_v13 = vpop.eup %700  ;;  %v106_v28 = vmax.f32 %v76_v47, 1e-24 }
 0x197   :  { %v132_v56 = vmul.f32 %v701_v13, %v1130_v27 }
 0x198   :  { %72 = vadd.xlane.f32.xlu0 %v71_v34  ;;  %706 = vrsqrt.f32 %v106_v28 }
 0x199   :  { %148 = vst.msk [vmem:[%s1405_s3 + $0x10] sm:$0xff] %vm49_vm2, %v132_v56  ;;  %v82_v5 = vpop.xlane.xlu1 %81 }
 0x19a   :  { %v703_v3 = vpop.eup %702  ;;  %v108_v30 = vmax.f32 %v82_v5, 1e-24 }
 0x19b   :  { %v134_v18 = vmul.f32 %v703_v3, %v1138_v0 }
 0x19c   :  { %78 = vadd.xlane.f32.xlu0 %v77_v10  ;;  %708 = vrsqrt.f32 %v108_v30 }
 0x19d   :  { %150 = vst.msk [vmem:[%s1405_s3 + $0x20] sm:$0xff] %vm49_vm2, %v134_v18  ;;  %v88_v20 = vpop.xlane.xlu1 %87 }
 0x19e   :  { %v705_v4 = vpop.eup %704  ;;  %v110_v27 = vmax.f32 %v88_v20, 1e-24 }
 0x19f   :  { %v136_v11 = vmul.f32 %v705_v4, %v1146_v14 }
 0x1a0   :  { %84 = vadd.xlane.f32.xlu0 %v83_v38  ;;  %710 = vrsqrt.f32 %v110_v27 }
 0x1a1   :  { %152 = vst.msk [vmem:[%s1405_s3 + $0x30] sm:$0xff] %vm49_vm2, %v136_v11  ;;  %v94_v55 = vpop.xlane.xlu1 %93 }
 0x1a2   :  { %v707_v21 = vpop.eup %706  ;;  %v112_v0 = vmax.f32 %v94_v55, 1e-24 }
 0x1a3   :  { %v138_v41 = vmul.f32 %v707_v21, %v1154_v63 }
 0x1a4   :  { %90 = vadd.xlane.f32.xlu0 %v89_v46  ;;  %712 = vrsqrt.f32 %v112_v0 }
 0x1a5   :  { %154 = vst.msk [vmem:[%s1405_s3 + $0x40] sm:$0xff] %vm49_vm2, %v138_v41 }
 0x1a6   :  { %v709_v48 = vpop.eup %708 }
 0x1a7   :  { %v140_v14 = vmul.f32 %v709_v48, %v1162_v32 }
 0x1a8   :  { %96 = vadd.xlane.f32.xlu0 %v95_v61 }
 0x1a9   :  { %156 = vst.msk [vmem:[%s1405_s3 + $0x50] sm:$0xff] %vm49_vm2, %v140_v14 }
 0x1aa   :  { %v711_v62 = vpop.eup %710 }
 0x1ab   :  { %v142_v49 = vmul.f32 %v711_v62, %v1170_v2 }
 0x1ad   :  { %158 = vst.msk [vmem:[%s1405_s3 + $0x60] sm:$0xff] %vm49_vm2, %v142_v49 }
 0x1ae   :  { %v713_v63 = vpop.eup %712 }
 0x1af   :  { %v144_v22 = vmul.f32 %v713_v63, %v1178_v15 }
 0x1b1   :  { %160 = vst.msk [vmem:[%s1405_s3 + $0x70] sm:$0xff] %vm49_vm2, %v144_v22 }
 0x215   :  { %v599_v32 = vpop.xlane.xlu0 %598 }
 0x216   :  { %v600_v26 = vrot.slane %v599_v32, 4 }
 0x218   :  { %v601_v53 = vadd.f32 %v600_v26, %v599_v32 }
 0x219   :  { %v55_v8 = vpop.xlane.xlu0 %54 }
 0x21a   :  { %v602_v23 = vrot.slane %v601_v53, 2  ;;  %v99_v43 = vmax.f32 %v55_v8, 1e-24 }
 0x21c   :  { %v603_v2 = vadd.f32 %v602_v23, %v601_v53  ;;  %714 = vrsqrt.f32 %v99_v43 }
 0x21d   :  { %v61_v42 = vpop.xlane.xlu0 %60 }
 0x21e   :  { %v604_v25 = vrot.slane %v603_v2, 1  ;;  %v101_v45 = vmax.f32 %v61_v42, 1e-24 }
 0x220   :  { %v605_v9 = vadd.f32 %v604_v25, %v603_v2  ;;  %716 = vrsqrt.f32 %v101_v45 }
 0x221   :  { %v67_v36 = vpop.xlane.xlu0 %66 }
 0x222   :  { %628 = vpush %v605_v9  ;;  %v103_v15 = vmax.f32 %v67_v36, 1e-24 }
 0x224   :  { %718 = vrsqrt.f32 %v103_v15 }
 0x225   :  { %v73_v50 = vpop.xlane.xlu0 %72 }
 0x226   :  { %v715_v34 = vpop.eup %714  ;;  %v105_v54 = vmax.f32 %v73_v50, 1e-24 }
 0x227   :  { %v131_v10 = vmul.f32 %v715_v34, %v1246_v17 }
 0x228   :  { %720 = vrsqrt.f32 %v105_v54 }
 0x229   :  { %147 = vst.msk [vmem:[%s1405_s3 + $0x8] sm:$0xff] %vm49_vm2, %v131_v10  ;;  %v79_v31 = vpop.xlane.xlu0 %78 }
 0x22a   :  { %v717_v38 = vpop.eup %716  ;;  %v107_v60 = vmax.f32 %v79_v31, 1e-24 }
 0x22b   :  { %v133_v46 = vmul.f32 %v717_v38, %v1255_v19 }
 0x22c   :  { %722 = vrsqrt.f32 %v107_v60 }
 0x22d   :  { %149 = vst.msk [vmem:[%s1405_s3 + $0x18] sm:$0xff] %vm49_vm2, %v133_v46  ;;  %v85_v40 = vpop.xlane.xlu0 %84 }
 0x22e   :  { %v719_v61 = vpop.eup %718  ;;  %v109_v17 = vmax.f32 %v85_v40, 1e-24 }
 0x22f   :  { %v135_v24 = vmul.f32 %v719_v61, %v1263_v58 }
 0x230   :  { %724 = vrsqrt.f32 %v109_v17 }
 0x231   :  { %151 = vst.msk [vmem:[%s1405_s3 + $0x28] sm:$0xff] %vm49_vm2, %v135_v24  ;;  %v91_v35 = vpop.xlane.xlu0 %90 }
 0x232   :  { %v721_v51 = vpop.eup %720  ;;  %v111_v19 = vmax.f32 %v91_v35, 1e-24 }
 0x233   :  { %v137_v59 = vmul.f32 %v721_v51, %v1271_v44 }
 0x234   :  { %726 = vrsqrt.f32 %v111_v19 }
 0x235   :  { %153 = vst.msk [vmem:[%s1405_s3 + $0x38] sm:$0xff] %vm49_vm2, %v137_v59  ;;  %v97_v6 = vpop.xlane.xlu0 %96 }
 0x236   :  { %v723_v52 = vpop.eup %722  ;;  %v113_v58 = vmax.f32 %v97_v6, 1e-24 }
 0x237   :  { %v139_v16 = vmul.f32 %v723_v52, %v1279_v29 }
 0x238   :  { %728 = vrsqrt.f32 %v113_v58 }
 0x239   :  { %155 = vst.msk [vmem:[%s1405_s3 + $0x48] sm:$0xff] %vm49_vm2, %v139_v16 }
 0x23a   :  { %v725_v33 = vpop.eup %724 }
 0x23b   :  { %v141_v44 = vmul.f32 %v725_v33, %v1287_v7 }
 0x23d   :  { %157 = vst.msk [vmem:[%s1405_s3 + $0x58] sm:$0xff] %vm49_vm2, %v141_v44 }
 0x23e   :  { %v727_v1 = vpop.eup %726 }
 0x23f   :  { %v143_v39 = vmul.f32 %v727_v1, %v1295_v57 }
 0x241   :  { %159 = vst.msk [vmem:[%s1405_s3 + $0x68] sm:$0xff] %vm49_vm2, %v143_v39 }
 0x242   :  { %v729_v29 = vpop.eup %728 }
 0x243   :  { %v145_v47 = vmul.f32 %v729_v29, %v1303_v37 }
 0x245   :  { %161 = vst.msk [vmem:[%s1405_s3 + $0x78] sm:$0xff] %vm49_vm2, %v145_v47 }
 0x253   :  { %s629_s6 = spop %628 }
 0x254   :  { %v607_v7 = vstv %s629_s6 }
 0x255   :  { %v608_v57 = vsel %vm565_vm4, %v607_v7, 0.0 }
 0x256   :  { %609 = vst [vmem:[#allocation2] sm:$0x1] %v608_v57 }
 0x257   :  { %741 = shalt.err (!%p738_p4)
}
 0x258   :  { %s742_s3 = scalar_lea.hbm %s1406_s4, 16 }
 0x259   :  { %p743_p5 = scmp.ne.s32.totalorder %s1406_s4, %s742_s3  ;;  %p746_p6 = scmp.lt.u32.totalorder %s742_s3, %s1406_s4 }
 0x25b   :  { %p748_p7 = pnand %p746_p6, %p743_p5 }
 0x25d   :  { %751 = shalt.err (!%p748_p7)
}
 0x25e   :  { %621 = dma.vmem_to_hbm [thread:$0]  %s619_s5, 16, %s1406_s4, [#allocation3]  }
 0x25f   :  { %752 = dma.done.wait [#allocation3], 16  }
 0x260   :  { %753 = vsyncadd [#allocation3], 4294967280 }
 0x261   :  { %627 = vsyncpa [#allocation3], 1 }

</bundles_post_ra>
